<compile_context>
chip_gen: v5e
topology: v5e:2x2
jax: 0.10.0
libtpu: 0.0.40
codegen_flags: <defaults>
</compile_context>

<pallas_src>
import functools
import math

import jax
import jax.numpy as jnp
from jax.experimental import pallas as pl
from jax.experimental.pallas import tpu as pltpu


def _round_up(x, m):
    return ((x + m - 1) // m) * m


def _pick_tile(dim, cap):
    """Largest multiple of 128 that divides `dim` and is <= cap (dim % 128 == 0)."""
    for t in (512, 256, 128):
        if t <= cap and dim % t == 0:
            return t
    return 128


def _fused_linear_kernel(x_ref, w_ref, b_ref, o_ref, acc_ref):
    """One (tm, tn) output tile of  x @ W' + b'  with f32 accumulation.

    Grid: (i rows, j cols, k reduction — innermost/"arbitrary").
    The bias (carrying -inf in the padded lanes) is folded into the accumulator
    init; zero weight columns keep those lanes at exactly -inf.
    """
    k = pl.program_id(2)

    @pl.when(k == 0)
    def _init():
        acc_ref[...] = jnp.broadcast_to(
            b_ref[...].astype(jnp.float32), acc_ref.shape)

    acc_ref[...] += jnp.dot(x_ref[...], w_ref[...],
                            preferred_element_type=jnp.float32)

    @pl.when(k == pl.num_programs(2) - 1)
    def _store():
        o_ref[...] = acc_ref[...].astype(o_ref.dtype)


def fused_padded_linear(x2d, w_pad, b_pad, *, tm_max=256, tk_max=512, tn_max=512):
    """x2d: (N, Dp), w_pad: (Dp, Cp), b_pad: (Cp,) -> (N, Cp) float32.

    Dp and Cp must be multiples of 128 (guaranteed by the caller's padding).
    """
    N, D = x2d.shape
    Dw, C = w_pad.shape
    assert D == Dw and D % 128 == 0 and C % 128 == 0

    tm = min(tm_max, _round_up(N, 8))        # rows per tile (sublane-aligned)
    tk = _pick_tile(D, tk_max)
    tn = _pick_tile(C, tn_max)

    n_pad = _round_up(N, tm)
    if n_pad != N:
        x2d = jnp.pad(x2d, ((0, n_pad - N), (0, 0)))
    b2d = b_pad.reshape(1, C).astype(jnp.float32)

    grid = (n_pad // tm, C // tn, D // tk)

    # Explicit VMEM budget: double-buffered x/w/b/out tiles + the f32 accumulator.
    isz = jnp.dtype(x2d.dtype).itemsize
    wsz = jnp.dtype(w_pad.dtype).itemsize
    vmem_est = 2 * (tm * tk * isz + tk * tn * wsz + tm * tn * 4 + tn * 4) + tm * tn * 4
    vmem_limit = int(min(max(vmem_est + (2 << 20), 8 << 20), 32 << 20))

    out = pl.pallas_call(
        _fused_linear_kernel,
        out_shape=jax.ShapeDtypeStruct((n_pad, C), jnp.float32),
        grid_spec=pltpu.PrefetchScalarGridSpec(
            num_scalar_prefetch=0,
            grid=grid,
            in_specs=[
                pl.BlockSpec((tm, tk), lambda i, j, k: (i, k)),   # x tile
                pl.BlockSpec((tk, tn), lambda i, j, k: (k, j)),   # W' tile
                pl.BlockSpec((1, tn), lambda i, j, k: (0, j)),    # b' stripe
            ],
            out_specs=pl.BlockSpec((tm, tn), lambda i, j, k: (i, j)),
            scratch_shapes=[pltpu.VMEM((tm, tn), jnp.float32)],
        ),
        compiler_params=pltpu.CompilerParams(
            dimension_semantics=("parallel", "parallel", "arbitrary"),
            vmem_limit_bytes=vmem_limit,
        ),
    )(x2d, w_pad, b2d)
    return out[:N]


class ClassPredictorPallas:
    """JAX/Pallas re-implementation of ClassPredictor (eval-mode forward).

    compute_dtype=jnp.bfloat16 feeds the MXU bf16 operands (recommended on
    v6e/v7x; accumulation stays f32).  min_rows_for_pallas routes tiny inputs
    through plain XLA where kernel-launch overhead would dominate.
    """

    def __init__(self, n_embd, dict_sizes, key,
                 compute_dtype=jnp.float32, min_rows_for_pallas=1024):
        self.n_embd = n_embd
        self.dict_sizes = list(dict_sizes)
        self.num_dicts = len(self.dict_sizes)
        self.out_dim = sum(self.dict_sizes)
        self.max_size = max(self.dict_sizes)
        self.compute_dtype = compute_dtype
        self.min_rows_for_pallas = min_rows_for_pallas

        # nn.Linear default init: U(-1/sqrt(fan_in), 1/sqrt(fan_in)).
        kw, kb = jax.random.split(key)
        bound = 1.0 / math.sqrt(n_embd)
        # Stored transposed: (n_embd, out_dim), matching x @ W_t + b.
        self.w = jax.random.uniform(
            kw, (n_embd, self.out_dim), jnp.float32, -bound, bound)
        self.b = jax.random.uniform(
            kb, (self.out_dim,), jnp.float32, -bound, bound)

        # Fused, lane-dense parameter layout: stripe j occupies columns
        # [j*Mp, (j+1)*Mp); real logits in the first dict_sizes[j] lanes, the
        # rest get zero weights and a -inf bias (== pad_last_dim with -inf).
        self.d_pad = _round_up(n_embd, 128)
        self.m_pad = _round_up(self.max_size, 128)
        c_pad = self.num_dicts * self.m_pad
        w_pad = jnp.zeros((self.d_pad, c_pad), jnp.float32)
        b_pad = jnp.full((c_pad,), -jnp.inf, jnp.float32)
        start = 0
        for j, size in enumerate(self.dict_sizes):
            col = j * self.m_pad
            w_pad = w_pad.at[:n_embd, col:col + size].set(
                self.w[:, start:start + size])
            b_pad = b_pad.at[col:col + size].set(self.b[start:start + size])
            start += size
        self.w_pad = w_pad.astype(compute_dtype)
        self.b_pad = b_pad  # kept f32; carries the -inf pad values

    @functools.partial(jax.jit, static_argnums=0)
    def forward(self, embs):
        """embs: (*, n_embd) -> (*, num_dicts, max_dict_size)  (eval-mode output)."""
        lead = embs.shape[:-1]
        n_rows = math.prod(lead)
        x2d = embs.reshape(-1, self.n_embd).astype(self.compute_dtype)
        if self.d_pad != self.n_embd:
            x2d = jnp.pad(x2d, ((0, 0), (0, self.d_pad - self.n_embd)))

        if n_rows >= self.min_rows_for_pallas:
            logits_p = fused_padded_linear(x2d, self.w_pad, self.b_pad)
        else:
            # Tiny problem: per-grid-step / launch overhead dominates -> plain XLA.
            logits_p = jnp.dot(x2d, self.w_pad,
                               preferred_element_type=jnp.float32) + self.b_pad

        out = logits_p.reshape(*lead, self.num_dicts, self.m_pad)
        return out[..., :self.max_size]

    # TODO(synk): training branch (CrossEntropyLoss reductions) and multinomial
    # sampling in `sample` are host/framework-level ops, not implemented as kernels.


if __name__ == "__main__":
    key = jax.random.PRNGKey(0)
    k_param, k_x = jax.random.split(key)

    B, S, D = 2, 8, 32
    dict_sizes = [5, 3]                       # token['dict_sizes']
    embs = jax.random.normal(k_x, (B, S, D), dtype=jnp.float32)

    # Force the Pallas path even at demo sizes (min_rows_for_pallas=0) so the
    # kernel is exercised; real deployments keep the default dispatch threshold.
    model = ClassPredictorPallas(n_embd=D, dict_sizes=dict_sizes, key=k_param,
                                 min_rows_for_pallas=0)
    out = jax.block_until_ready(model.forward(embs))

    # Pure-JAX reference of the original eval-mode semantics.
    ref_logits = embs @ model.w + model.b
    ref, start = [], 0
    for size in dict_sizes:
        lj = ref_logits[..., start:start + size]
        start += size
        pad = max(dict_sizes) - size
        if pad > 0:
            lj = jnp.concatenate(
                [lj, jnp.full((B, S, pad), -jnp.inf, jnp.float32)], axis=-1)
        ref.append(lj[..., None, :])
    ref = jnp.concatenate(ref, axis=-2)

    assert out.shape == (B, S, len(dict_sizes), max(dict_sizes))
    finite = jnp.isfinite(ref)
    assert bool(jnp.all(jnp.where(finite, jnp.abs(out - ref) < 1e-4, out == ref)))

    # bf16-operand variant (v6e/v7x MXU path): compare the Pallas kernel against
    # the plain-XLA fallback of the same padded layout; both accumulate in f32.
    model_bf = ClassPredictorPallas(n_embd=D, dict_sizes=dict_sizes, key=k_param,
                                    compute_dtype=jnp.bfloat16,
                                    min_rows_for_pallas=0)
    model_bf_xla = ClassPredictorPallas(n_embd=D, dict_sizes=dict_sizes, key=k_param,
                                        compute_dtype=jnp.bfloat16,
                                        min_rows_for_pallas=1 << 30)
    out_bf = jax.block_until_ready(model_bf.forward(embs))
    ref_bf = jax.block_until_ready(model_bf_xla.forward(embs))
    finite_bf = jnp.isfinite(ref_bf)
    assert bool(jnp.all(jnp.where(finite_bf, jnp.abs(out_bf - ref_bf) < 1e-3,
                                  out_bf == ref_bf)))

    print("KERNEL_OK")
</pallas_src>

<mosaic_0001>
module attributes {stable_mosaic.version = 11 : i64} {
  func.func @_fused_linear_kernel(%arg0: i32, %arg1: i32, %arg2: i32, %arg3: memref<16x128xf32, #tpu.memory_space<vmem>>, %arg4: memref<128x256xf32, #tpu.memory_space<vmem>>, %arg5: memref<1x256xf32, #tpu.memory_space<vmem>>, %arg6: memref<16x256xf32, #tpu.memory_space<vmem>>, %arg7: memref<16x256xf32, #tpu.memory_space<vmem>>) attributes {dimension_semantics = [#tpu.dimension_semantics<parallel>, #tpu.dimension_semantics<parallel>, #tpu.dimension_semantics<arbitrary>], iteration_bounds = array<i64: 1, 1, 1>, scalar_prefetch = 0 : i64, scratch_operands = 1 : i64, tpu.core_type = #tpu.core_type<tc>, window_params = [{transform_indices = @transform_0, window_bounds = array<i64: 16, 128>}, {transform_indices = @transform_1, window_bounds = array<i64: 128, 256>}, {transform_indices = @transform_2, window_bounds = array<i64: 1, 256>}, {transform_indices = @transform_3, window_bounds = array<i64: 16, 256>}]} {
    %c0_i32 = arith.constant 0 : i32
    %0 = arith.cmpi eq, %arg2, %c0_i32 : i32
    %1 = arith.extui %0 : i1 to i32
    %c0_i32_0 = arith.constant 0 : i32
    %2 = arith.cmpi ne, %1, %c0_i32_0 : i32
    scf.if %2 {
      %c0_10 = arith.constant 0 : index
      %c0_11 = arith.constant 0 : index
      %12 = vector.load %arg5[%c0_10, %c0_11] : memref<1x256xf32, #tpu.memory_space<vmem>>, vector<1x256xf32>
      %13 = vector.shape_cast %12 : vector<1x256xf32> to vector<1x256xf32>
      %14 = vector.broadcast %13 : vector<1x256xf32> to vector<16x256xf32>
      %c0_12 = arith.constant 0 : index
      %c0_13 = arith.constant 0 : index
      %15 = vector.load %arg7[%c0_12, %c0_13] : memref<16x256xf32, #tpu.memory_space<vmem>>, vector<16x256xf32>
      tpu.vector_store %arg7[%c0_12, %c0_13], %14 {strides = array<i32>} : memref<16x256xf32, #tpu.memory_space<vmem>>, vector<16x256xf32>,
    } else {
    }
    %c0 = arith.constant 0 : index
    %c0_1 = arith.constant 0 : index
    %3 = vector.load %arg7[%c0, %c0_1] : memref<16x256xf32, #tpu.memory_space<vmem>>, vector<16x256xf32>
    %c0_2 = arith.constant 0 : index
    %c0_3 = arith.constant 0 : index
    %4 = vector.load %arg3[%c0_2, %c0_3] : memref<16x128xf32, #tpu.memory_space<vmem>>, vector<16x128xf32>
    %c0_4 = arith.constant 0 : index
    %c0_5 = arith.constant 0 : index
    %5 = vector.load %arg4[%c0_4, %c0_5] : memref<128x256xf32, #tpu.memory_space<vmem>>, vector<128x256xf32>
    %cst = arith.constant dense<0.000000e+00> : vector<16x256xf32>
    %6 = tpu.matmul %4, %5, %cst {dimension_numbers = #tpu.dot_dimension_numbers<[1], [0], [0], [1], [0, 0, 1, 1], [], []>} : vector<16x128xf32>, vector<128x256xf32>, vector<16x256xf32> -> vector<16x256xf32>
    %7 = arith.addf %3, %6 : vector<16x256xf32>
    %c0_6 = arith.constant 0 : index
    %c0_7 = arith.constant 0 : index
    %8 = vector.load %arg7[%c0_6, %c0_7] : memref<16x256xf32, #tpu.memory_space<vmem>>, vector<16x256xf32>
    tpu.vector_store %arg7[%c0_6, %c0_7], %7 {strides = array<i32>} : memref<16x256xf32, #tpu.memory_space<vmem>>, vector<16x256xf32>,
    %c0_i32_8 = arith.constant 0 : i32
    %9 = arith.cmpi eq, %arg2, %c0_i32_8 : i32
    %10 = arith.extui %9 : i1 to i32
    %c0_i32_9 = arith.constant 0 : i32
    %11 = arith.cmpi ne, %10, %c0_i32_9 : i32
    scf.if %11 {
      %c0_10 = arith.constant 0 : index
      %c0_11 = arith.constant 0 : index
      %12 = vector.load %arg7[%c0_10, %c0_11] : memref<16x256xf32, #tpu.memory_space<vmem>>, vector<16x256xf32>
      %c0_12 = arith.constant 0 : index
      %c0_13 = arith.constant 0 : index
      %13 = vector.load %arg6[%c0_12, %c0_13] : memref<16x256xf32, #tpu.memory_space<vmem>>, vector<16x256xf32>
      tpu.vector_store %arg6[%c0_12, %c0_13], %12 {strides = array<i32>} : memref<16x256xf32, #tpu.memory_space<vmem>>, vector<16x256xf32>,
    } else {
    }
    return
  }
  func.func @transform_0(%arg0: i32, %arg1: i32, %arg2: i32) -> (i32, i32) {
    %c0_i32 = arith.constant 0 : i32
    return %arg0, %arg2 : i32, i32
  }
  func.func @transform_1(%arg0: i32, %arg1: i32, %arg2: i32) -> (i32, i32) {
    %c0_i32 = arith.constant 0 : i32
    return %arg2, %arg1 : i32, i32
  }
  func.func @transform_2(%arg0: i32, %arg1: i32, %arg2: i32) -> (i32, i32) {
    %c0_i32 = arith.constant 0 : i32
    %c0_i32_0 = arith.constant 0 : i32
    return %c0_i32, %arg1 : i32, i32
  }
  func.func @transform_3(%arg0: i32, %arg1: i32, %arg2: i32) -> (i32, i32) {
    %c0_i32 = arith.constant 0 : i32
    return %arg0, %arg1 : i32, i32
  }
}

</mosaic_0001>

<bundles_post_ra>
// kernel: forward.1
= control target key start
LH: loop header
LB: loop body
LE: loop exit
PB: predicated region body
PF: predicated region fallthrough
CT: control target
= control target key end

     0   :  { %8 = vsyncpa [#allocation4], 0  ;;  %s213_s15 = smov [#allocation3]   ;;  %s214_s17 = smov 256   ;;  %s260_s0 = inlined_call_operand.vmem [shape: f32[16,128], index: 0, kind: input, shape index: {}]   ;;  %s261_s1 = inlined_call_operand.hbm [shape: f32[128,256], index: 1, kind: input, shape index: {}]   ;;  %s262_s2 = inlined_call_operand.vmem [shape: f32[1,256], index: 2, kind: input, shape index: {}]   ;;  %s263_s3 = inlined_call_operand.vmem [shape: f32[16,256], index: 3, kind: output, shape index: {}]  }
   0x1   :  { %s15_s14 = sshll.u32 %s261_s1, 4  ;;  %s17_s16 = sshll.u32 %s213_s15, 4  ;;  %s16_s14 = int_to_ptr.hbm [resolvable:$true] %s15_s14  ;;  %s18_s16 = int_to_ptr.vmem [resolvable:$true] %s17_s16 }
   0x2   :  { %s215_s18 = smov 16  }
   0x3   :  { %23 = dma.hbm_to_vmem [thread:$0]  %s16_s14, 4096, %s18_s16, [#allocation4], %s214_s17, %s214_s17, %s215_s18  }
   0x4   :  { %211 = dma.done.wait [#allocation4], 4096  }
   0x5   :  { %212 = vsyncadd [#allocation4], 4294963200  ;;  %v80_v0 = vld [vmem:[#allocation3 + $0xf0] sm:$0xff]  ;;  %v81_v1 = vld [vmem:[#allocation3 + $0xf8] sm:$0xff] }
   0x6   :  { %v78_v2 = vld [vmem:[#allocation3 + $0xe0] sm:$0xff]  ;;  %152 = vmatpush.msra.mxu2 %v80_v0  ;;  %168 = vmatpush.msra.mxu3 %v81_v1  ;;  %v79_v3 = vld [vmem:[#allocation3 + $0xe8] sm:$0xff]  ;;  %v76_v4 = vld [vmem:[#allocation3 + $0xd0] sm:$0xff] }
   0x7   :  { %v77_v5 = vld [vmem:[#allocation3 + $0xd8] sm:$0xff]  ;;  %82 = vmatpush.msra.mxu0 %v80_v0  ;;  %105 = vmatpush.msra.mxu1 %v81_v1  ;;  %v74_v6 = vld [vmem:[#allocation3 + $0xc0] sm:$0xff]  ;;  %v75_v7 = vld [vmem:[#allocation3 + $0xc8] sm:$0xff] }
   0x8   :  { %153 = vmatpush.msra.mxu2 %v78_v2  ;;  %169 = vmatpush.msra.mxu3 %v79_v3  ;;  %v72_v8 = vld [vmem:[#allocation3 + $0xb0] sm:$0xff]  ;;  %v73_v9 = vld [vmem:[#allocation3 + $0xb8] sm:$0xff]  ;;  %v70_v10 = vld [vmem:[#allocation3 + $0xa0] sm:$0xff] }
   0x9   :  { %83 = vmatpush.msra.mxu0 %v78_v2  ;;  %106 = vmatpush.msra.mxu1 %v79_v3  ;;  %v71_v11 = vld [vmem:[#allocation3 + $0xa8] sm:$0xff]  ;;  %v68_v12 = vld [vmem:[#allocation3 + $0x90] sm:$0xff]  ;;  %v69_v13 = vld [vmem:[#allocation3 + $0x98] sm:$0xff] }
   0xa   :  { %154 = vmatpush.msra.mxu2 %v76_v4  ;;  %170 = vmatpush.msra.mxu3 %v77_v5  ;;  %v66_v14 = vld [vmem:[#allocation3 + $0x80] sm:$0xff]  ;;  %v67_v15 = vld [vmem:[#allocation3 + $0x88] sm:$0xff]  ;;  %v64_v16 = vld [vmem:[#allocation3 + $0x70] sm:$0xff] }
   0xb   :  { %84 = vmatpush.msra.mxu0 %v76_v4  ;;  %107 = vmatpush.msra.mxu1 %v77_v5  ;;  %v65_v17 = vld [vmem:[#allocation3 + $0x78] sm:$0xff]  ;;  %v62_v18 = vld [vmem:[#allocation3 + $0x60] sm:$0xff]  ;;  %v63_v19 = vld [vmem:[#allocation3 + $0x68] sm:$0xff] }
   0xc   :  { %155 = vmatpush.msra.mxu2 %v74_v6  ;;  %171 = vmatpush.msra.mxu3 %v75_v7  ;;  %v60_v20 = vld [vmem:[#allocation3 + $0x50] sm:$0xff]  ;;  %v61_v21 = vld [vmem:[#allocation3 + $0x58] sm:$0xff]  ;;  %v58_v22 = vld [vmem:[#allocation3 + $0x40] sm:$0xff] }
   0xd   :  { %85 = vmatpush.msra.mxu0 %v74_v6  ;;  %108 = vmatpush.msra.mxu1 %v75_v7  ;;  %v59_v23 = vld [vmem:[#allocation3 + $0x48] sm:$0xff]  ;;  %v56_v24 = vld [vmem:[#allocation3 + $0x30] sm:$0xff]  ;;  %v57_v25 = vld [vmem:[#allocation3 + $0x38] sm:$0xff] }
   0xe   :  { %156 = vmatpush.msra.mxu2 %v72_v8  ;;  %172 = vmatpush.msra.mxu3 %v73_v9  ;;  %v54_v26 = vld [vmem:[#allocation3 + $0x20] sm:$0xff]  ;;  %v55_v27 = vld [vmem:[#allocation3 + $0x28] sm:$0xff]  ;;  %v52_v28 = vld [vmem:[#allocation3 + $0x10] sm:$0xff] }
   0xf   :  { %86 = vmatpush.msra.mxu0 %v72_v8  ;;  %109 = vmatpush.msra.mxu1 %v73_v9  ;;  %v53_v29 = vld [vmem:[#allocation3 + $0x18] sm:$0xff]  ;;  %v50_v30 = vld [vmem:[#allocation3] sm:$0xff]  ;;  %v51_v31 = vld [vmem:[#allocation3 + $0x8] sm:$0xff] }
  0x10   :  { %157 = vmatpush.msra.mxu2 %v70_v10  ;;  %173 = vmatpush.msra.mxu3 %v71_v11  ;;  %v49_v32 = vld [vmem:[%s260_s0 + $0x8] sm:$0xff]  ;;  %v48_v33 = vld [vmem:[%s260_s0] sm:$0xff] }
  0x11   :  { %87 = vmatpush.msra.mxu0 %v70_v10  ;;  %110 = vmatpush.msra.mxu1 %v71_v11  ;;  %v34_v34 = vld [vmem:[%s262_s2] sm:$0x3] }
  0x12   :  { %158 = vmatpush.msra.mxu2 %v68_v12  ;;  %174 = vmatpush.msra.mxu3 %v69_v13  ;;  %v36_v35 = vperm.slane %v34_v34, 0  ;;  %v37_v36 = vperm.slane %v34_v34, 1 }
  0x13   :  { %88 = vmatpush.msra.mxu0 %v68_v12  ;;  %111 = vmatpush.msra.mxu1 %v69_v13 }
  0x14   :  { %159 = vmatpush.msra.mxu2 %v66_v14  ;;  %175 = vmatpush.msra.mxu3 %v67_v15 }
  0x15   :  { %89 = vmatpush.msra.mxu0 %v66_v14  ;;  %112 = vmatpush.msra.mxu1 %v67_v15 }
  0x16   :  { %160 = vmatpush.msra.mxu2 %v64_v16  ;;  %176 = vmatpush.msra.mxu3 %v65_v17 }
  0x17   :  { %90 = vmatpush.msra.mxu0 %v64_v16  ;;  %113 = vmatpush.msra.mxu1 %v65_v17 }
  0x18   :  { %161 = vmatpush.msra.mxu2 %v62_v18  ;;  %177 = vmatpush.msra.mxu3 %v63_v19 }
  0x19   :  { %91 = vmatpush.msra.mxu0 %v62_v18  ;;  %114 = vmatpush.msra.mxu1 %v63_v19 }
  0x1a   :  { %162 = vmatpush.msra.mxu2 %v60_v20  ;;  %178 = vmatpush.msra.mxu3 %v61_v21 }
  0x1b   :  { %92 = vmatpush.msra.mxu0 %v60_v20  ;;  %115 = vmatpush.msra.mxu1 %v61_v21 }
  0x1c   :  { %163 = vmatpush.msra.mxu2 %v58_v22  ;;  %179 = vmatpush.msra.mxu3 %v59_v23 }
  0x1d   :  { %93 = vmatpush.msra.mxu0 %v58_v22  ;;  %116 = vmatpush.msra.mxu1 %v59_v23 }
  0x1e   :  { %164 = vmatpush.msra.mxu2 %v56_v24  ;;  %180 = vmatpush.msra.mxu3 %v57_v25 }
  0x1f   :  { %94 = vmatpush.msra.mxu0 %v56_v24  ;;  %117 = vmatpush.msra.mxu1 %v57_v25 }
  0x20   :  { %165 = vmatpush.msra.mxu2 %v54_v26  ;;  %181 = vmatpush.msra.mxu3 %v55_v27 }
  0x21   :  { %95 = vmatpush.msra.mxu0 %v54_v26  ;;  %118 = vmatpush.msra.mxu1 %v55_v27 }
  0x22   :  { %166 = vmatpush.msra.mxu2 %v52_v28  ;;  %182 = vmatpush.msra.mxu3 %v53_v29 }
  0x23   :  { %96 = vmatpush.msra.mxu0 %v52_v28  ;;  %119 = vmatpush.msra.mxu1 %v53_v29 }
  0x24   :  { %167 = vmatpush.msra.mxu2 %v50_v30  ;;  %183 = vmatpush.msra.mxu3 %v51_v31 }
  0x25   :  { %101 = vmatmul.f32.vlgmr.msra.gmra.mxu2 %v49_v32  ;;  %124 = vmatmul.f32.vlgmr.msra.gmra.mxu3 %v49_v32 }
  0x26   :  { %97 = vmatpush.msra.mxu0 %v50_v30  ;;  %120 = vmatpush.msra.mxu1 %v51_v31 }
  0x27   :  { %98 = vmatmul.f32.vlgmr.msra.gmra.mxu0 %v48_v33  ;;  %121 = vmatmul.f32.vlgmr.msra.gmra.mxu1 %v48_v33 }
  0xa4   :  { %v99_v37 = vpop.f32.mrf.mxu0  ;;  %v122_v38 = vpop.f32.mrf.mxu1 }
  0xa5   :  { %v128_v39 = vadd.f32 %v99_v37, %v36_v35  ;;  %v129_v40 = vadd.f32 %v122_v38, %v37_v36 }
  0xa7   :  { %143 = vst [vmem:[%s263_s3] sm:$0xff] %v128_v39 }
  0xa8   :  { %v102_v41 = vpop.f32.mrf.mxu2  ;;  %144 = vst [vmem:[%s263_s3 + $0x8] sm:$0xff] %v129_v40  ;;  %v125_v42 = vpop.f32.mrf.mxu3 }
  0xa9   :  { %v130_v43 = vadd.f32 %v102_v41, %v36_v35  ;;  %v131_v44 = vadd.f32 %v125_v42, %v37_v36 }
  0xab   :  { %145 = vst [vmem:[%s263_s3 + $0x10] sm:$0xff] %v130_v43 }
  0xac   :  { %146 = vst [vmem:[%s263_s3 + $0x18] sm:$0xff] %v131_v44 }
  0xad   :  { %151 = vsyncpa [#allocation4], 1 }

</bundles_post_ra>
